<compile_context>
chip_gen: v7x
topology: tpu7x:2x2x1
jax: 0.10.0
libtpu: 0.0.40
codegen_flags: <defaults>
</compile_context>

<pallas_src>
import functools

import jax
import jax.numpy as jnp
from jax.experimental import pallas as pl
from jax.experimental.pallas import tpu as pltpu

EPS = 1e-12  # torch.nn.functional.normalize default eps


def _round_up(x, m):
    return ((x + m - 1) // m) * m


def _multihead_kernel(feats_ref, w1t_ref, b1_ref, wpt_ref, logits_ref, z_ref):
    """One grid step == one tile of rows; all heads fused.

    feats_ref : (tn, Din)      f32   (cast to bf16 in-kernel, under MXU slack)
    w1t_ref   : (Din, H*Dp)    bf16  head-packed projector weights, Dout padded to Dp (x128)
    b1_ref    : (1, H*Dp)      f32   head-packed projector bias (zero in padding)
    wpt_ref   : (H, Dp, P)     bf16  per-head prototypes^T (rows pre-normalized; zero pad rows)
    logits_ref: (H, tn, P)     out   head-major logits (module layout, no wrapper transpose)
    z_ref     : (H, tn, Dout)  out   head-major normalized projections
    """
    H, Dp, P = wpt_ref.shape
    Dout = z_ref.shape[-1]

    # Cast in VMEM (no separate wrapper HBM pass); fused projector across heads:
    # one lane-dense MXU matmul with f32 accumulation.
    feats = feats_ref[...].astype(w1t_ref.dtype)
    zall = jnp.dot(feats, w1t_ref[...], preferred_element_type=jnp.float32)
    zall = zall + b1_ref[...]                               # (tn, H*Dp) f32; padded lanes stay 0

    for h in range(H):                                      # H static & small
        z_h = zall[:, h * Dp:(h + 1) * Dp]                  # 128-lane-aligned slice -> free view
        # F.normalize(z, dim=1): z / max(||z||, eps) == z * rsqrt(max(||z||^2, eps^2))
        # (differs only when ||z|| < 1e-12; padded lanes are 0 so sumsq is exact).
        sumsq = jnp.sum(z_h * z_h, axis=-1, keepdims=True)  # f32 reduction
        inv = jax.lax.rsqrt(jnp.maximum(sumsq, EPS * EPS))  # EUP, off the VALU path
        zn_h = z_h * inv                                     # (tn, Dp) f32
        # Store each head as soon as it is ready: frees live ranges, no lane concat.
        z_ref[h] = zn_h[:, :Dout].astype(z_ref.dtype)
        # Prototype head: Linear without bias; bf16 operands, f32 accumulation.
        logits_ref[h] = jnp.dot(zn_h.astype(wpt_ref.dtype), wpt_ref[h],
                                preferred_element_type=jnp.float32
                                ).astype(logits_ref.dtype)


def prepare_params(w1, b1, wproto, compute_dtype=jnp.bfloat16):
    """One-time weight prep (normalize prototypes, pad, transpose, cast).

    w1: (H, Dout, Din), b1: (H, Dout), wproto: (H, P, Dout)
    Returns (w1t, b1p, wpt, Dout) with Dout padded to Dp = round_up(Dout, 128).
    """
    H, Dout, Din = w1.shape
    Dp = _round_up(Dout, 128)
    pad = Dp - Dout

    # normalize_prototypes() at init: L2-normalize each prototype row (dim=1), in f32.
    pn = jnp.maximum(jnp.sqrt(jnp.sum(wproto * wproto, axis=-1, keepdims=True)), EPS)
    wproto_n = wproto / pn

    # Zero-pad the output feature dim so per-head segments are 128-lane aligned.
    w1p = jnp.pad(w1, ((0, 0), (0, pad), (0, 0)))            # (H, Dp, Din)
    b1p = jnp.pad(b1, ((0, 0), (0, pad)))                    # (H, Dp)
    wpp = jnp.pad(wproto_n, ((0, 0), (0, 0), (0, pad)))      # (H, P, Dp)

    w1t = jnp.transpose(w1p, (2, 0, 1)).reshape(Din, H * Dp).astype(compute_dtype)
    b1r = b1p.reshape(1, H * Dp).astype(jnp.float32)
    wpt = jnp.transpose(wpp, (0, 2, 1)).astype(compute_dtype)  # (H, Dp, P)
    return w1t, b1r, wpt, Dout


def _vmem_limit_bytes():
    """Generation-aware scoped-VMEM limit (v7x: 64 MiB physical; v5e/v6e: 128 MiB)."""
    try:
        phys = pltpu.get_tpu_info().vmem_capacity_bytes
    except Exception:
        phys = 64 * 1024 * 1024          # conservative (v7x)
    return int(min(phys * 3 // 4, 100 * 1024 * 1024))


def _pick_row_tile(N, Din, H, Dp, Dout, P, vmem_limit, out_itemsize):
    """Largest multiple-of-8 row tile whose buffers fit ~60% of the VMEM limit."""
    budget = int(vmem_limit * 0.6)
    # Weights are grid-invariant (single-buffered); bytes per row for the pipelined blocks.
    weight_bytes = Din * H * Dp * 2 + H * Dp * 4 + H * Dp * P * 2
    per_row = (2 * Din * 4 +                      # feats block (f32), double-buffered
               2 * H * P * out_itemsize +         # logits block, double-buffered
               2 * H * Dout * out_itemsize +      # z block, double-buffered
               H * Dp * 4)                        # zall intermediate (f32)
    avail = max(budget - weight_bytes, per_row * 8)
    tn = max(8, min(1024, (avail // per_row) // 8 * 8))
    if N <= tn:
        if N >= 256:
            # Ensure >=2 grid steps so the "parallel" axis can shard across
            # v7x's two TensorCores (costs one ~0.35us step elsewhere).
            return min(tn, _round_up((N + 1) // 2, 8))
        return N
    return tn


def _resident_spec(shape, index_map):
    """BlockSpec for a grid-invariant block; single-buffer it if the API allows."""
    buffered = getattr(pl, "Buffered", None)
    if buffered is not None:
        try:
            return pl.BlockSpec(shape, index_map, pipeline_mode=buffered(1))
        except TypeError:
            pass
    return pl.BlockSpec(shape, index_map)


@functools.partial(jax.jit, static_argnames=("out_dim", "out_dtype"))
def multihead_forward(feats, w1t, b1p, wpt, *, out_dim, out_dtype=jnp.float32):
    """feats: (N, Din) f32. Returns (logits (H, N, P), z (H, N, out_dim))."""
    N, Din = feats.shape
    H, Dp, P = wpt.shape
    HDp = H * Dp

    vmem_limit = _vmem_limit_bytes()
    out_itemsize = jnp.dtype(out_dtype).itemsize
    tn = _pick_row_tile(N, Din, H, Dp, out_dim, P, vmem_limit, out_itemsize)
    grid = (pl.cdiv(N, tn),)

    logits, z = pl.pallas_call(
        _multihead_kernel,
        out_shape=(
            jax.ShapeDtypeStruct((H, N, P), out_dtype),
            jax.ShapeDtypeStruct((H, N, out_dim), out_dtype),
        ),
        grid=grid,
        in_specs=[
            pl.BlockSpec((tn, Din), lambda i: (i, 0)),            # row tile of feats (f32)
            _resident_spec((Din, HDp), lambda i: (0, 0)),         # weights VMEM-resident
            _resident_spec((1, HDp), lambda i: (0, 0)),
            _resident_spec((H, Dp, P), lambda i: (0, 0, 0)),
        ],
        out_specs=(
            pl.BlockSpec((H, tn, P), lambda i: (0, i, 0)),        # head-major, stored directly
            pl.BlockSpec((H, tn, out_dim), lambda i: (0, i, 0)),
        ),
        compiler_params=pltpu.CompilerParams(
            dimension_semantics=("parallel",),                    # N-tiles shard across TCs
            vmem_limit_bytes=vmem_limit,
        ),
    )(feats, w1t, b1p, wpt)
    return logits, z


def _reference(feats, w1, b1, wproto):
    """Pure f32 reference mirroring the torch module."""
    pn = jnp.maximum(jnp.sqrt(jnp.sum(wproto * wproto, axis=-1, keepdims=True)), EPS)
    wproto_n = wproto / pn
    z = jnp.einsum("nd,hod->hno", feats, w1) + b1[:, None, :]
    zn = z / jnp.maximum(jnp.sqrt(jnp.sum(z * z, axis=-1, keepdims=True)), EPS)
    logits = jnp.einsum("hno,hpo->hnp", zn, wproto_n)
    return logits, zn


def _run_case(key, N, Din, Dout, P, H):
    k_feats, k_w1, k_b1, k_wp = jax.random.split(key, 4)
    feats = jax.random.normal(k_feats, (N, Din), dtype=jnp.float32)
    w1 = 0.1 * jax.random.normal(k_w1, (H, Dout, Din), dtype=jnp.float32)
    b1 = 0.1 * jax.random.normal(k_b1, (H, Dout), dtype=jnp.float32)
    wproto = jax.random.normal(k_wp, (H, P, Dout), dtype=jnp.float32)

    w1t, b1p, wpt, out_dim = prepare_params(w1, b1, wproto)   # once at init
    logits, z = multihead_forward(feats, w1t, b1p, wpt, out_dim=out_dim)
    jax.block_until_ready((logits, z))

    ref_logits, ref_z = _reference(feats, w1, b1, wproto)
    assert logits.shape == (H, N, P) and z.shape == (H, N, Dout)
    # bf16 MXU operands with f32 accumulation -> relaxed tolerance vs f32 reference.
    assert jnp.allclose(logits, ref_logits, atol=3e-2, rtol=3e-2), \
        float(jnp.max(jnp.abs(logits - ref_logits)))
    assert jnp.allclose(z, ref_z, atol=3e-2, rtol=3e-2), \
        float(jnp.max(jnp.abs(z - ref_z)))


if __name__ == "__main__":
    key = jax.random.PRNGKey(0)
    k0, k1 = jax.random.split(key)

    # Small shapes consistent with the module's forward
    # (hidden_dim is unused: MLP collapses to a single Linear).
    _run_case(k0, N=8, Din=32, Dout=16, P=32, H=3)
    # A slightly larger case that exercises a multi-step grid and lane-aligned Dout.
    _run_case(k1, N=256, Din=96, Dout=128, P=256, H=2)

    print("KERNEL_OK")
</pallas_src>

<mosaic_0001>
module attributes {stable_mosaic.version = 11 : i64} {
  func.func @_multihead_kernel(%arg0: i32, %arg1: memref<8x32xf32, #tpu.memory_space<vmem>>, %arg2: memref<32x384xbf16, #tpu.memory_space<vmem>>, %arg3: memref<1x384xf32, #tpu.memory_space<vmem>>, %arg4: memref<3x128x32xbf16, #tpu.memory_space<vmem>>, %arg5: memref<3x8x32xf32, #tpu.memory_space<vmem>>, %arg6: memref<3x8x16xf32, #tpu.memory_space<vmem>>) attributes {dimension_semantics = [#tpu.dimension_semantics<parallel>], iteration_bounds = array<i64: 1>, scalar_prefetch = 0 : i64, scratch_operands = 0 : i64, tpu.core_type = #tpu.core_type<tc>, window_params = [{transform_indices = @transform_0, window_bounds = array<i64: 8, 32>}, {pipeline_mode = #tpu.pipeline_mode<synchronous>, transform_indices = @transform_1, window_bounds = array<i64: 32, 384>}, {pipeline_mode = #tpu.pipeline_mode<synchronous>, transform_indices = @transform_2, window_bounds = array<i64: 1, 384>}, {pipeline_mode = #tpu.pipeline_mode<synchronous>, transform_indices = @transform_3, window_bounds = array<i64: 3, 128, 32>}, {transform_indices = @transform_4, window_bounds = array<i64: 3, 8, 32>}, {transform_indices = @transform_5, window_bounds = array<i64: 3, 8, 16>}]} {
    %c0 = arith.constant 0 : index
    %c0_0 = arith.constant 0 : index
    %0 = vector.load %arg1[%c0, %c0_0] : memref<8x32xf32, #tpu.memory_space<vmem>>, vector<8x32xf32>
    %1 = arith.truncf %0 : vector<8x32xf32> to vector<8x32xbf16>
    %c0_1 = arith.constant 0 : index
    %c0_2 = arith.constant 0 : index
    %2 = vector.load %arg2[%c0_1, %c0_2] : memref<32x384xbf16, #tpu.memory_space<vmem>>, vector<32x384xbf16>
    %cst = arith.constant dense<0.000000e+00> : vector<8x384xf32>
    %3 = tpu.matmul %1, %2, %cst {dimension_numbers = #tpu.dot_dimension_numbers<[1], [0], [0], [1], [0, 0, 1, 1], [], []>} : vector<8x32xbf16>, vector<32x384xbf16>, vector<8x384xf32> -> vector<8x384xf32>
    %c0_3 = arith.constant 0 : index
    %c0_4 = arith.constant 0 : index
    %4 = vector.load %arg3[%c0_3, %c0_4] : memref<1x384xf32, #tpu.memory_space<vmem>>, vector<1x384xf32>
    %5 = vector.broadcast %4 : vector<1x384xf32> to vector<8x384xf32>
    %6 = arith.addf %3, %5 : vector<8x384xf32>
    %7 = vector.extract_strided_slice %6 {offsets = [0, 0], sizes = [8, 128], strides = [1, 1]} : vector<8x384xf32> to vector<8x128xf32>
    %8 = arith.mulf %7, %7 : vector<8x128xf32>
    %cst_5 = arith.constant dense<0.000000e+00> : vector<8xf32>
    %9 = vector.multi_reduction <add>, %8, %cst_5 [1] : vector<8x128xf32> to vector<8xf32>
    %10 = vector.shape_cast %9 : vector<8xf32> to vector<8x1xf32>
    %cst_6 = arith.constant 1.000000e-24 : f32
    %11 = vector.broadcast %cst_6 : f32 to vector<8x1xf32>
    %12 = arith.maximumf %10, %11 : vector<8x1xf32>
    %13 = math.rsqrt %12 : vector<8x1xf32>
    %14 = vector.broadcast %13 : vector<8x1xf32> to vector<8x128xf32>
    %15 = arith.mulf %7, %14 : vector<8x128xf32>
    %16 = vector.extract_strided_slice %15 {offsets = [0, 0], sizes = [8, 16], strides = [1, 1]} : vector<8x128xf32> to vector<8x16xf32>
    %c0_7 = arith.constant 0 : index
    %c0_8 = arith.constant 0 : index
    %c0_9 = arith.constant 0 : index
    %17 = vector.load %arg6[%c0_7, %c0_8, %c0_9] : memref<3x8x16xf32, #tpu.memory_space<vmem>>, vector<1x8x16xf32>
    %18 = vector.shape_cast %17 : vector<1x8x16xf32> to vector<8x16xf32>
    %19 = vector.shape_cast %16 : vector<8x16xf32> to vector<1x8x16xf32>
    tpu.vector_store %arg6[%c0_7, %c0_8, %c0_9], %19 {strides = array<i32>} : memref<3x8x16xf32, #tpu.memory_space<vmem>>, vector<1x8x16xf32>,
    %20 = arith.truncf %15 : vector<8x128xf32> to vector<8x128xbf16>
    %c0_10 = arith.constant 0 : index
    %c0_11 = arith.constant 0 : index
    %c0_12 = arith.constant 0 : index
    %21 = vector.load %arg4[%c0_10, %c0_11, %c0_12] : memref<3x128x32xbf16, #tpu.memory_space<vmem>>, vector<1x128x32xbf16>
    %22 = vector.shape_cast %21 : vector<1x128x32xbf16> to vector<128x32xbf16>
    %cst_13 = arith.constant dense<0.000000e+00> : vector<8x32xf32>
    %23 = tpu.matmul %20, %22, %cst_13 {dimension_numbers = #tpu.dot_dimension_numbers<[1], [0], [0], [1], [0, 0, 1, 1], [], []>} : vector<8x128xbf16>, vector<128x32xbf16>, vector<8x32xf32> -> vector<8x32xf32>
    %c0_14 = arith.constant 0 : index
    %c0_15 = arith.constant 0 : index
    %c0_16 = arith.constant 0 : index
    %24 = vector.load %arg5[%c0_14, %c0_15, %c0_16] : memref<3x8x32xf32, #tpu.memory_space<vmem>>, vector<1x8x32xf32>
    %25 = vector.shape_cast %24 : vector<1x8x32xf32> to vector<8x32xf32>
    %26 = vector.shape_cast %23 : vector<8x32xf32> to vector<1x8x32xf32>
    tpu.vector_store %arg5[%c0_14, %c0_15, %c0_16], %26 {strides = array<i32>} : memref<3x8x32xf32, #tpu.memory_space<vmem>>, vector<1x8x32xf32>,
    %27 = vector.extract_strided_slice %6 {offsets = [0, 128], sizes = [8, 128], strides = [1, 1]} : vector<8x384xf32> to vector<8x128xf32>
    %28 = arith.mulf %27, %27 : vector<8x128xf32>
    %cst_17 = arith.constant dense<0.000000e+00> : vector<8xf32>
    %29 = vector.multi_reduction <add>, %28, %cst_17 [1] : vector<8x128xf32> to vector<8xf32>
    %30 = vector.shape_cast %29 : vector<8xf32> to vector<8x1xf32>
    %cst_18 = arith.constant 1.000000e-24 : f32
    %31 = vector.broadcast %cst_18 : f32 to vector<8x1xf32>
    %32 = arith.maximumf %30, %31 : vector<8x1xf32>
    %33 = math.rsqrt %32 : vector<8x1xf32>
    %34 = vector.broadcast %33 : vector<8x1xf32> to vector<8x128xf32>
    %35 = arith.mulf %27, %34 : vector<8x128xf32>
    %36 = vector.extract_strided_slice %35 {offsets = [0, 0], sizes = [8, 16], strides = [1, 1]} : vector<8x128xf32> to vector<8x16xf32>
    %c1 = arith.constant 1 : index
    %c0_19 = arith.constant 0 : index
    %c0_20 = arith.constant 0 : index
    %37 = vector.load %arg6[%c1, %c0_19, %c0_20] : memref<3x8x16xf32, #tpu.memory_space<vmem>>, vector<1x8x16xf32>
    %38 = vector.shape_cast %37 : vector<1x8x16xf32> to vector<8x16xf32>
    %39 = vector.shape_cast %36 : vector<8x16xf32> to vector<1x8x16xf32>
    tpu.vector_store %arg6[%c1, %c0_19, %c0_20], %39 {strides = array<i32>} : memref<3x8x16xf32, #tpu.memory_space<vmem>>, vector<1x8x16xf32>,
    %40 = arith.truncf %35 : vector<8x128xf32> to vector<8x128xbf16>
    %c1_21 = arith.constant 1 : index
    %c0_22 = arith.constant 0 : index
    %c0_23 = arith.constant 0 : index
    %41 = vector.load %arg4[%c1_21, %c0_22, %c0_23] : memref<3x128x32xbf16, #tpu.memory_space<vmem>>, vector<1x128x32xbf16>
    %42 = vector.shape_cast %41 : vector<1x128x32xbf16> to vector<128x32xbf16>
    %cst_24 = arith.constant dense<0.000000e+00> : vector<8x32xf32>
    %43 = tpu.matmul %40, %42, %cst_24 {dimension_numbers = #tpu.dot_dimension_numbers<[1], [0], [0], [1], [0, 0, 1, 1], [], []>} : vector<8x128xbf16>, vector<128x32xbf16>, vector<8x32xf32> -> vector<8x32xf32>
    %c1_25 = arith.constant 1 : index
    %c0_26 = arith.constant 0 : index
    %c0_27 = arith.constant 0 : index
    %44 = vector.load %arg5[%c1_25, %c0_26, %c0_27] : memref<3x8x32xf32, #tpu.memory_space<vmem>>, vector<1x8x32xf32>
    %45 = vector.shape_cast %44 : vector<1x8x32xf32> to vector<8x32xf32>
    %46 = vector.shape_cast %43 : vector<8x32xf32> to vector<1x8x32xf32>
    tpu.vector_store %arg5[%c1_25, %c0_26, %c0_27], %46 {strides = array<i32>} : memref<3x8x32xf32, #tpu.memory_space<vmem>>, vector<1x8x32xf32>,
    %47 = vector.extract_strided_slice %6 {offsets = [0, 256], sizes = [8, 128], strides = [1, 1]} : vector<8x384xf32> to vector<8x128xf32>
    %48 = arith.mulf %47, %47 : vector<8x128xf32>
    %cst_28 = arith.constant dense<0.000000e+00> : vector<8xf32>
    %49 = vector.multi_reduction <add>, %48, %cst_28 [1] : vector<8x128xf32> to vector<8xf32>
    %50 = vector.shape_cast %49 : vector<8xf32> to vector<8x1xf32>
    %cst_29 = arith.constant 1.000000e-24 : f32
    %51 = vector.broadcast %cst_29 : f32 to vector<8x1xf32>
    %52 = arith.maximumf %50, %51 : vector<8x1xf32>
    %53 = math.rsqrt %52 : vector<8x1xf32>
    %54 = vector.broadcast %53 : vector<8x1xf32> to vector<8x128xf32>
    %55 = arith.mulf %47, %54 : vector<8x128xf32>
    %56 = vector.extract_strided_slice %55 {offsets = [0, 0], sizes = [8, 16], strides = [1, 1]} : vector<8x128xf32> to vector<8x16xf32>
    %c2 = arith.constant 2 : index
    %c0_30 = arith.constant 0 : index
    %c0_31 = arith.constant 0 : index
    %57 = vector.load %arg6[%c2, %c0_30, %c0_31] : memref<3x8x16xf32, #tpu.memory_space<vmem>>, vector<1x8x16xf32>
    %58 = vector.shape_cast %57 : vector<1x8x16xf32> to vector<8x16xf32>
    %59 = vector.shape_cast %56 : vector<8x16xf32> to vector<1x8x16xf32>
    tpu.vector_store %arg6[%c2, %c0_30, %c0_31], %59 {strides = array<i32>} : memref<3x8x16xf32, #tpu.memory_space<vmem>>, vector<1x8x16xf32>,
    %60 = arith.truncf %55 : vector<8x128xf32> to vector<8x128xbf16>
    %c2_32 = arith.constant 2 : index
    %c0_33 = arith.constant 0 : index
    %c0_34 = arith.constant 0 : index
    %61 = vector.load %arg4[%c2_32, %c0_33, %c0_34] : memref<3x128x32xbf16, #tpu.memory_space<vmem>>, vector<1x128x32xbf16>
    %62 = vector.shape_cast %61 : vector<1x128x32xbf16> to vector<128x32xbf16>
    %cst_35 = arith.constant dense<0.000000e+00> : vector<8x32xf32>
    %63 = tpu.matmul %60, %62, %cst_35 {dimension_numbers = #tpu.dot_dimension_numbers<[1], [0], [0], [1], [0, 0, 1, 1], [], []>} : vector<8x128xbf16>, vector<128x32xbf16>, vector<8x32xf32> -> vector<8x32xf32>
    %c2_36 = arith.constant 2 : index
    %c0_37 = arith.constant 0 : index
    %c0_38 = arith.constant 0 : index
    %64 = vector.load %arg5[%c2_36, %c0_37, %c0_38] : memref<3x8x32xf32, #tpu.memory_space<vmem>>, vector<1x8x32xf32>
    %65 = vector.shape_cast %64 : vector<1x8x32xf32> to vector<8x32xf32>
    %66 = vector.shape_cast %63 : vector<8x32xf32> to vector<1x8x32xf32>
    tpu.vector_store %arg5[%c2_36, %c0_37, %c0_38], %66 {strides = array<i32>} : memref<3x8x32xf32, #tpu.memory_space<vmem>>, vector<1x8x32xf32>,
    return
  }
  func.func @transform_0(%arg0: i32) -> (i32, i32) {
    %c0_i32 = arith.constant 0 : i32
    %c0_i32_0 = arith.constant 0 : i32
    return %arg0, %c0_i32 : i32, i32
  }
  func.func @transform_1(%arg0: i32) -> (i32, i32) {
    %c0_i32 = arith.constant 0 : i32
    %c0_i32_0 = arith.constant 0 : i32
    %c0_i32_1 = arith.constant 0 : i32
    return %c0_i32, %c0_i32_0 : i32, i32
  }
  func.func @transform_2(%arg0: i32) -> (i32, i32) {
    %c0_i32 = arith.constant 0 : i32
    %c0_i32_0 = arith.constant 0 : i32
    %c0_i32_1 = arith.constant 0 : i32
    return %c0_i32, %c0_i32_0 : i32, i32
  }
  func.func @transform_3(%arg0: i32) -> (i32, i32, i32) {
    %c0_i32 = arith.constant 0 : i32
    %c0_i32_0 = arith.constant 0 : i32
    %c0_i32_1 = arith.constant 0 : i32
    %c0_i32_2 = arith.constant 0 : i32
    return %c0_i32, %c0_i32_0, %c0_i32_1 : i32, i32, i32
  }
  func.func @transform_4(%arg0: i32) -> (i32, i32, i32) {
    %c0_i32 = arith.constant 0 : i32
    %c0_i32_0 = arith.constant 0 : i32
    %c0_i32_1 = arith.constant 0 : i32
    return %c0_i32, %arg0, %c0_i32_0 : i32, i32, i32
  }
  func.func @transform_5(%arg0: i32) -> (i32, i32, i32) {
    %c0_i32 = arith.constant 0 : i32
    %c0_i32_0 = arith.constant 0 : i32
    %c0_i32_1 = arith.constant 0 : i32
    return %c0_i32, %arg0, %c0_i32_0 : i32, i32, i32
  }
}

</mosaic_0001>

<bundles_post_ra>
// kernel: multihead_forward.1
= control target key start
LH: loop header
LB: loop body
LE: loop exit
PB: predicated region body
PF: predicated region fallthrough
CT: control target
= control target key end

     0   :  { %11 = vsyncpa [#allocation3], 0  ;;  %v799_v2 = vmov 0   ;;  %v800_v5 = vmov 0.0   ;;  %vm801_vm0 = vmmov 0   ;;  %vm81_vm1 = vcmask 261120   ;;  %s1004_s0 = inlined_call_operand.vmem [shape: f32[8,32], index: 0, kind: input, shape index: {}]   ;;  %s1005_s1 = inlined_call_operand.vmem [shape: bf16[32,384], index: 1, kind: input, shape index: {}]   ;;  %s1006_s2 = inlined_call_operand.vmem [shape: f32[1,384], index: 2, kind: input, shape index: {}]   ;;  %s1007_s3 = inlined_call_operand.vmem [shape: bf16[3,128,32], index: 3, kind: input, shape index: {}]   ;;  %s1008_s4 = inlined_call_operand.hbm [shape: f32[3,8,32], index: 4, kind: output, shape index: {0}]   ;;  %s1009_s5 = inlined_call_operand.hbm [shape: f32[3,8,16], index: 5, kind: output, shape index: {1}]  }
   0x1   :  { %v713_v0 = vld [vmem:[%s1005_s1 + $0x4] ss:$12 sps:$4 sm:$0xff]   ;;  %v715_v1 = vld [vmem:[%s1005_s1] ss:$12 sps:$4 sm:$0xff]   ;;  %117 = vmatprep.mubr.bf16.mxu1 %v799_v2  ;;  %v716_v3 = vld [vmem:[%s1005_s1 + $0x1c] ss:$12 sps:$4 sm:$0xff]   ;;  %646 = vmatprep.subr.bf16.mxu0 %v800_v5 }
   0x2   :  { %85 = vmatprep.subr.bf16.mxu1 %v713_v0  ;;  %v718_v4 = vld [vmem:[%s1005_s1 + $0x18] ss:$12 sps:$4 sm:$0xff]   ;;  %662 = vmatprep.mubr.msk.bf16.mxu0 %vm801_vm0, %v800_v5  ;;  %v719_v7 = vld [vmem:[%s1005_s1 + $0x8] ss:$12 sps:$4 sm:$0xff]   ;;  %v720_v9 = vld [vmem:[%s1005_s1 + $0x20] ss:$12 sps:$4 sm:$0xff]  }
   0x3   :  { %86 = vmatpush1.bf16.msra.mxu1 %v715_v1  ;;  %v22_v6 = vld [vmem:[%s1004_s0] sm:$0xff] }
   0x4   :  { %87 = vmatprep.subr.bf16.mxu1 %v716_v3  ;;  %v23_v8 = vpack.c.bf16 %v22_v6, %v22_v6 }
   0x7   :  { %88 = vmatpush1.bf16.msra.mxu1 %v718_v4 }
   0x8   :  { %638 = vmatprep.subr.bf16.mxu1 %v800_v5 }
   0xa   :  { %550 = vmatmul.mubr.msk.bf16.vlgmr.msra.gmra.mrb[0].mxu1 %vm81_vm1, %v23_v8 }
   0xb   :  { %639 = vmatpush3.bf16.msra.mxu1 %v719_v7  ;;  %642 = vmatprep.mubr.msk.bf16.mxu1 %vm801_vm0, %v800_v5 }
   0xc   :  { %640 = vmatprep.subr.bf16.mxu1 %v800_v5 }
   0xf   :  { %641 = vmatpush3.bf16.msra.mxu1 %v720_v9 }
  0x10   :  { %666 = vmatprep.subr.bf16.mxu1 %v800_v5 }
  0x12   :  { %643 = vmatmul.mubr.msk.bf16.vlgmr.msra.gmra.mrb[4].mxu1 %vm81_vm1, %v23_v8 }
  0x13   :  { %682 = vmatprep.mubr.msk.bf16.mxu1 %vm801_vm0, %v800_v5 }
  0x14   :  { %12 = vsyncpa [#allocation5], 0  ;;  %v721_v10 = vld [vmem:[%s1007_s3] sm:$0xff]   ;;  %v722_v12 = vld [vmem:[%s1007_s3 + $0x8] sm:$0xff]   ;;  %v34_v17 = vlaneseq  ;;  %vm172_vm2 = vcmask 130048   ;;  %s802_s26 = smov [#allocation4]  }
  0x15   :  { %v723_v11 = vld [vmem:[%s1007_s3 + $0x40] sm:$0xff]   ;;  %647 = vmatpush3.bf16.msra.mxu0 %v721_v10  ;;  %v725_v13 = vld [vmem:[%s1007_s3 + $0x48] sm:$0xff]   ;;  %v724_v14 = vld [vmem:[%s1007_s3 + $0x10] sm:$0xff]   ;;  %s529_s27 = sshll.u32 %s802_s26, 4  ;;  %s530_s27 = int_to_ptr.vmem [resolvable:$true] %s529_s27 }
  0x16   :  { %667 = vmatpush3.bf16.msra.mxu1 %v723_v11  ;;  %648 = vmatprep.subr.bf16.mxu0 %v800_v5  ;;  %v727_v15 = vld [vmem:[%s1007_s3 + $0x50] sm:$0xff]   ;;  %v726_v16 = vld [vmem:[%s1007_s3 + $0x18] sm:$0xff]   ;;  %v35_v18 = vshrl.u32 %v34_v17, 7  ;;  %v32_v20 = vld [vmem:[%s1006_s2] sm:$0x7]  ;;  %s751_s28 = scalar_lea.vmem %s530_s27, 384  ;;  %p756_p1 = scmp.lt.s32.totalorder %s530_s27, %s530_s27 }
  0x17   :  { %668 = vmatprep.subr.bf16.mxu1 %v800_v5  ;;  %v728_v40 = vld [vmem:[%s1007_s3 + $0x20] sm:$0xff]   ;;  %v729_v41 = vld [vmem:[%s1007_s3 + $0x58] sm:$0xff]   ;;  %v730_v42 = vld [vmem:[%s1007_s3 + $0x28] sm:$0xff]   ;;  %p752_p0 = scmp.ne.s32.totalorder %s530_s27, %s751_s28  ;;  %p757_p2 = scmp.lt.s32.totalorder %s751_s28, %s751_s28 }
  0x18   :  { %v36_v19 = vsub.s32 0, %v35_v18  ;;  %v40_v21 = vsub.s32 1, %v35_v18  ;;  %v44_v27 = vsub.s32 2, %v35_v18  ;;  %v731_v43 = vld [vmem:[%s1007_s3 + $0x60] sm:$0xff]   ;;  %v732_v44 = vld [vmem:[%s1007_s3 + $0x30] sm:$0xff]   ;;  %v733_v45 = vld [vmem:[%s1007_s3 + $0x68] sm:$0xff]  }
  0x19   :  { %649 = vmatpush3.bf16.msra.mxu0 %v722_v12  ;;  %v734_v46 = vld [vmem:[%s1007_s3 + $0x38] sm:$0xff]   ;;  %v735_v47 = vld [vmem:[%s1007_s3 + $0x70] sm:$0xff]   ;;  %v736_v57 = vld [vmem:[%s1007_s3 + $0x80] sm:$0xff]   ;;  %p758_p3 = por %p757_p2, %p756_p1 }
  0x1a   :  { %669 = vmatpush3.bf16.msra.mxu1 %v725_v13  ;;  %650 = vmatprep.subr.bf16.mxu0 %v800_v5  ;;  %v37_v22 = vrot.slane %v32_v20, %v36_v19  ;;  %v41_v23 = vrot.slane %v32_v20, %v40_v21  ;;  %v45_v32 = vrot.slane %v32_v20, %v44_v27  ;;  %v737_v48 = vld [vmem:[%s1007_s3 + $0x78] sm:$0xff]   ;;  %v738_v61 = vld [vmem:[%s1007_s3 + $0x88] sm:$0xff]   ;;  %v739_v1 = vld [vmem:[%s1007_s3 + $0x90] sm:$0xff]  }
  0x1b   :  { %670 = vmatprep.subr.bf16.mxu1 %v800_v5  ;;  %v740_v2 = vld [vmem:[%s1007_s3 + $0x98] sm:$0xff]   ;;  %v741_v3 = vld [vmem:[%s1007_s3 + $0xa0] sm:$0xff]   ;;  %v742_v4 = vld [vmem:[%s1007_s3 + $0xa8] sm:$0xff]   ;;  %p759_p4 = pnand %p758_p3, %p752_p0 }
  0x1c   :  { %v743_v6 = vld [vmem:[%s1007_s3 + $0xb0] sm:$0xff]   ;;  %v744_v7 = vld [vmem:[%s1007_s3 + $0xb8] sm:$0xff]  }
  0x1d   :  { %651 = vmatpush3.bf16.msra.mxu0 %v724_v14 }
  0x1e   :  { %671 = vmatpush3.bf16.msra.mxu1 %v727_v15  ;;  %652 = vmatprep.subr.bf16.mxu0 %v800_v5 }
  0x1f   :  { %672 = vmatprep.subr.bf16.mxu1 %v800_v5 }
  0x21   :  { %653 = vmatpush3.bf16.msra.mxu0 %v726_v16 }
  0x22   :  { %654 = vmatprep.subr.bf16.mxu0 %v800_v5  ;;  %673 = vmatpush3.bf16.msra.mxu1 %v729_v41 }
  0x23   :  { %674 = vmatprep.subr.bf16.mxu1 %v800_v5 }
  0x25   :  { %655 = vmatpush3.bf16.msra.mxu0 %v728_v40 }
  0x26   :  { %656 = vmatprep.subr.bf16.mxu0 %v800_v5  ;;  %675 = vmatpush3.bf16.msra.mxu1 %v731_v43 }
  0x27   :  { %676 = vmatprep.subr.bf16.mxu1 %v800_v5 }
  0x29   :  { %657 = vmatpush3.bf16.msra.mxu0 %v730_v42 }
  0x2a   :  { %658 = vmatprep.subr.bf16.mxu0 %v800_v5  ;;  %677 = vmatpush3.bf16.msra.mxu1 %v733_v45 }
  0x2b   :  { %678 = vmatprep.subr.bf16.mxu1 %v800_v5 }
  0x2d   :  { %659 = vmatpush3.bf16.msra.mxu0 %v732_v44 }
  0x2e   :  { %660 = vmatprep.subr.bf16.mxu0 %v800_v5  ;;  %679 = vmatpush3.bf16.msra.mxu1 %v735_v47 }
  0x2f   :  { %680 = vmatprep.subr.bf16.mxu1 %v800_v5 }
  0x31   :  { %661 = vmatpush3.bf16.msra.mxu0 %v734_v46 }
  0x32   :  { %686 = vmatprep.subr.bf16.mxu0 %v800_v5  ;;  %681 = vmatpush3.bf16.msra.mxu1 %v737_v48 }
  0xdd   :  { %v119_v24 = vpop.f32.mrb[0].mxu1 }
  0xde   :  { %v120_v25 = vadd.f32 %v119_v24, %v37_v22  ;;  %v121_v26 = vpop.f32.mrb[1].mxu1 }
  0xdf   :  { %v123_v28 = vpop.f32.mrb[2].mxu1  ;;  %v122_v29 = vadd.f32 %v121_v26, %v41_v23 }
  0xe0   :  { %v124_v30 = vpop.f32.mrb[3].mxu1  ;;  %v166_v31 = vmul.f32 %v120_v25, %v120_v25 }
  0xe1   :  { %v280_v33 = vmul.f32 %v122_v29, %v122_v29 }
  0xe2   :  { %167 = vadd.xlane.f32.xlu0 %v166_v31 }
  0xe5   :  { %v160_v34 = vpop.f32.mrb[4].mxu1 }
  0xe6   :  { %v161_v35 = vadd.f32 %v160_v34, %v45_v32  ;;  %281 = vadd.xlane.f32.xlu0 %v280_v33  ;;  %v644_v36 = vpop.f32.mrb[5].mxu1 }
  0xe7   :  { %v163_v37 = vpop.f32.mrb[6].mxu1 }
  0xe8   :  { %v396_v38 = vmul.f32 %v161_v35, %v161_v35  ;;  %v645_v39 = vpop.f32.mrb[7].mxu1 }
  0xea   :  { %397 = vadd.xlane.f32.xlu1 %v396_v38 }
 0x16f   :  { %v168_v49 = vpop.xlane.xlu0 %167 }
 0x170   :  { %v169_v50 = vmax.f32 %v168_v49, 1e-24 }
 0x172   :  { %745 = vrsqrt.f32 %v169_v50 }
 0x173   :  { %v282_v51 = vpop.xlane.xlu0 %281 }
 0x174   :  { %v283_v52 = vmax.f32 %v282_v51, 1e-24 }
 0x176   :  { %747 = vrsqrt.f32 %v283_v52 }
 0x177   :  { %v398_v53 = vpop.xlane.xlu1 %397 }
 0x178   :  { %v399_v54 = vmax.f32 %v398_v53, 1e-24 }
 0x17a   :  { %749 = vrsqrt.f32 %v399_v54 }
 0x17c   :  { %v746_v55 = vpop.eup %745 }
 0x17d   :  { %v171_v56 = vmul.f32 %v746_v55, %v120_v25 }
 0x17f   :  { %173 = vst.msk [vmem:[#allocation4] sm:$0xff] %vm172_vm2, %v171_v56  ;;  %v174_v58 = vpack.c.bf16 %v171_v56, %v171_v56 }
 0x180   :  { %v748_v59 = vpop.eup %747 }
 0x181   :  { %663 = vmatmul.mubr.bf16.vlgmr.msra.gmra.mrb[0].mxu0 %v174_v58  ;;  %v285_v60 = vmul.f32 %v748_v59, %v122_v29 }
 0x182   :  { %687 = vmatpush3.bf16.msra.mxu0 %v736_v57  ;;  %702 = vmatprep.mubr.msk.bf16.mxu0 %vm801_vm0, %v800_v5 }
 0x183   :  { %688 = vmatprep.subr.bf16.mxu0 %v800_v5  ;;  %287 = vst.msk [vmem:[#allocation4 + $0x8] sm:$0xff] %vm172_vm2, %v285_v60  ;;  %v288_v62 = vpack.c.bf16 %v285_v60, %v285_v60 }
 0x184   :  { %v750_v63 = vpop.eup %749 }
 0x185   :  { %683 = vmatmul.mubr.bf16.vlgmr.msra.gmra.mrb[8].mxu1 %v288_v62  ;;  %v401_v0 = vmul.f32 %v750_v63, %v161_v35 }
 0x186   :  { %689 = vmatpush3.bf16.msra.mxu0 %v738_v61 }
 0x187   :  { %690 = vmatprep.subr.bf16.mxu0 %v800_v5  ;;  %403 = vst.msk [vmem:[#allocation4 + $0x10] sm:$0xff] %vm172_vm2, %v401_v0  ;;  %v404_v8 = vpack.c.bf16 %v401_v0, %v401_v0 }
 0x18a   :  { %691 = vmatpush3.bf16.msra.mxu0 %v739_v1 }
 0x18b   :  { %692 = vmatprep.subr.bf16.mxu0 %v800_v5 }
 0x18e   :  { %693 = vmatpush3.bf16.msra.mxu0 %v740_v2 }
 0x18f   :  { %694 = vmatprep.subr.bf16.mxu0 %v800_v5 }
 0x192   :  { %695 = vmatpush3.bf16.msra.mxu0 %v741_v3 }
 0x193   :  { %696 = vmatprep.subr.bf16.mxu0 %v800_v5 }
 0x196   :  { %697 = vmatpush3.bf16.msra.mxu0 %v742_v4 }
 0x197   :  { %698 = vmatprep.subr.bf16.mxu0 %v800_v5 }
 0x19a   :  { %699 = vmatpush3.bf16.msra.mxu0 %v743_v6 }
 0x19b   :  { %700 = vmatprep.subr.bf16.mxu0 %v800_v5 }
 0x19e   :  { %701 = vmatpush3.bf16.msra.mxu0 %v744_v7 }
 0x1a1   :  { %703 = vmatmul.mubr.bf16.vlgmr.msra.gmra.mrb[4].mxu0 %v404_v8 }
 0x1a2   :  { %762 = shalt.err (!%p759_p4)
}
 0x1a3   :  { %s763_s6 = scalar_lea.hbm %s1009_s5, 384 }
 0x1a4   :  { %p764_p5 = scmp.ne.s32.totalorder %s1009_s5, %s763_s6  ;;  %p767_p6 = scmp.lt.u32.totalorder %s763_s6, %s1009_s5 }
 0x1a6   :  { %p769_p7 = pnand %p767_p6, %p764_p5 }
 0x1a8   :  { %772 = shalt.err (!%p769_p7)
}
 0x1a9   :  { %s803_s8 = smov 128   ;;  %s804_s9 = smov 8  }
 0x1aa   :  { %535 = dma.vmem_to_hbm [thread:$0]  %s530_s27, 384, %s1009_s5, [#allocation5], %s803_s8, %s803_s8, %s804_s9  }
 0x1ab   :  { %s805_s12 = smov [#allocation2]  }
 0x1ac   :  { %s517_s13 = sshll.u32 %s805_s12, 4  ;;  %s518_s13 = int_to_ptr.vmem [resolvable:$true] %s517_s13 }
 0x1ad   :  { %s773_s5 = scalar_lea.vmem %s518_s13, 384  ;;  %p778_p9 = scmp.lt.s32.totalorder %s518_s13, %s518_s13 }
 0x1ae   :  { %p774_p8 = scmp.ne.s32.totalorder %s518_s13, %s773_s5  ;;  %p779_p10 = scmp.lt.s32.totalorder %s773_s5, %s773_s5 }
 0x1b0   :  { %p780_p11 = por %p779_p10, %p778_p9 }
 0x1b2   :  { %p781_p12 = pnand %p780_p11, %p774_p8 }
 0x254   :  { %v273_v5 = vpop.f32.mrb[0].mxu0 }
 0x255   :  { %279 = vst.msk [vmem:[#allocation2] sm:$0xff] %vm81_vm1, %v273_v5  ;;  %v664_v9 = vpop.f32.mrb[1].mxu0 }
 0x256   :  { %v276_v10 = vpop.f32.mrb[2].mxu0 }
 0x257   :  { %v665_v11 = vpop.f32.mrb[3].mxu0 }
 0x258   :  { %v388_v12 = vpop.f32.mrb[8].mxu1 }
 0x259   :  { %395 = vst.msk [vmem:[#allocation2 + $0x8] sm:$0xff] %vm81_vm1, %v388_v12  ;;  %v684_v13 = vpop.f32.mrb[9].mxu1 }
 0x25a   :  { %v391_v14 = vpop.f32.mrb[10].mxu1 }
 0x25b   :  { %v685_v15 = vpop.f32.mrb[11].mxu1 }
 0x274   :  { %v504_v16 = vpop.f32.mrb[4].mxu0 }
 0x275   :  { %511 = vst.msk [vmem:[#allocation2 + $0x10] sm:$0xff] %vm81_vm1, %v504_v16  ;;  %v704_v17 = vpop.f32.mrb[5].mxu0 }
 0x276   :  { %v507_v18 = vpop.f32.mrb[6].mxu0 }
 0x277   :  { %784 = shalt.err (!%p781_p12)
}
 0x278   :  { %s785_s16 = scalar_lea.hbm %s1008_s4, 384 }
 0x279   :  { %p786_p13 = scmp.ne.s32.totalorder %s1008_s4, %s785_s16  ;;  %p789_p0 = scmp.lt.u32.totalorder %s785_s16, %s1008_s4 }
 0x27b   :  { %p791_p1 = pnand %p789_p0, %p786_p13 }
 0x27d   :  { %794 = shalt.err (!%p791_p1)
}
 0x27e   :  { %523 = dma.vmem_to_hbm [thread:$0]  %s518_s13, 384, %s1008_s4, [#allocation3], %s803_s8, %s803_s8, %s804_s9   ;;  %v705_v19 = vpop.f32.mrb[7].mxu0 }
 0x27f   :  { %795 = dma.done.wait [#allocation3], 384  }
 0x280   :  { %796 = vsyncadd [#allocation3], 4294966912 }
 0x281   :  { %797 = dma.done.wait [#allocation5], 384  }
 0x282   :  { %798 = vsyncadd [#allocation5], 4294966912 }
 0x283   :  { %542 = vsyncpa [#allocation3], 1 }
 0x284   :  { %543 = vsyncpa [#allocation5], 1 }

</bundles_post_ra>
